<compile_context>
chip_gen: v5e
topology: v5e:2x2
jax: 0.10.0
libtpu: 0.0.40
codegen_flags: <defaults>
</compile_context>

<pallas_src>
import jax
import jax.numpy as jnp
from jax.experimental import pallas as pl
from jax.experimental.pallas import tpu as pltpu


def _gap_single_block_kernel(hw_total: int):
    """H*W fits in one lane block: no scratch, no reduction carry."""
    inv_hw = 1.0 / float(hw_total)

    def kernel(x_ref, o_ref):
        s = jnp.sum(x_ref[...], axis=-1, keepdims=True, dtype=jnp.float32)
        o_ref[...] = (s * inv_hw).astype(o_ref.dtype)

    return kernel


def _gap_multi_block_kernel(hw_total: int, hw_blk: int):
    """H*W spans several lane blocks: f32 VMEM accumulator carried over grid axis 1."""
    needs_mask = (hw_total % hw_blk) != 0
    inv_hw = 1.0 / float(hw_total)

    def kernel(x_ref, o_ref, acc_ref):
        k = pl.program_id(1)

        @pl.when(k == 0)
        def _init():
            acc_ref[...] = jnp.zeros_like(acc_ref)

        x = x_ref[...]  # (rows_blk, hw_blk), input dtype — no whole-tile upcast
        if needs_mask:
            # Zero the padded tail of the last H*W block (cheap VALU, hidden under DMA).
            col = jax.lax.broadcasted_iota(jnp.int32, x.shape, dimension=1)
            valid = (k * hw_blk + col) < hw_total
            x = jnp.where(valid, x, jnp.zeros_like(x))

        acc_ref[...] += jnp.sum(x, axis=-1, keepdims=True, dtype=jnp.float32)

        @pl.when(k == pl.num_programs(1) - 1)
        def _finalize():
            o_ref[...] = (acc_ref[...] * inv_hw).astype(o_ref.dtype)

    return kernel


def _choose_tiles(R: int, HW: int, itemsize: int):
    """Pick (rows_blk, hw_blk): full extents when small, else ~4 MiB blocks."""
    rows_blk = R if R <= 256 else 256  # full extent or a multiple of 8
    target_bytes = 4 * 1024 * 1024
    max_lanes = max(128, (target_bytes // (rows_blk * itemsize)) // 128 * 128)
    hw_blk = HW if HW <= max_lanes else max_lanes  # full extent or a multiple of 128
    return rows_blk, hw_blk


def global_avg_pool2d(x, *, rows_blk=None, hw_blk=None):
    """x: (N, C, H, W) -> (N, C, 1, 1); matches F.avg_pool2d(x, kernel_size=(H, W))."""
    N, C, H, W = x.shape
    HW = H * W
    R = N * C
    x2 = x.reshape(R, HW)

    itemsize = jnp.dtype(x.dtype).itemsize
    auto_rows, auto_hw = _choose_tiles(R, HW, itemsize)
    rows_blk = auto_rows if rows_blk is None else rows_blk
    hw_blk = auto_hw if hw_blk is None else hw_blk

    row_steps = pl.cdiv(R, rows_blk)
    hw_steps = pl.cdiv(HW, hw_blk)
    grid = (row_steps, hw_steps)

    if hw_steps == 1:
        kernel = _gap_single_block_kernel(HW)
        scratch = []
    else:
        kernel = _gap_multi_block_kernel(HW, hw_blk)
        scratch = [pltpu.VMEM((rows_blk, 1), jnp.float32)]

    cost = pl.CostEstimate(
        flops=R * HW,
        transcendentals=0,
        bytes_accessed=R * HW * itemsize + R * itemsize,
    )

    out = pl.pallas_call(
        kernel,
        out_shape=jax.ShapeDtypeStruct((R, 1), x.dtype),
        grid_spec=pltpu.PrefetchScalarGridSpec(
            num_scalar_prefetch=0,
            grid=grid,
            in_specs=[pl.BlockSpec((rows_blk, hw_blk), lambda i, k: (i, k))],
            out_specs=pl.BlockSpec((rows_blk, 1), lambda i, k: (i, 0)),
            scratch_shapes=scratch,
        ),
        compiler_params=pltpu.CompilerParams(
            dimension_semantics=("parallel", "arbitrary"),
        ),
        cost_estimate=cost,
    )(x2)

    return out.reshape(N, C, 1, 1)


if __name__ == "__main__":
    key = jax.random.PRNGKey(0)
    k1, k2, k3, k4 = jax.random.split(key, 4)

    # Primary test: small shape consistent with the module (single-block fast path).
    N, C, H, W = 2, 4, 16, 16
    x = jax.random.normal(k1, (N, C, H, W), dtype=jnp.float32)
    out = jax.block_until_ready(global_avg_pool2d(x))
    ref = jnp.mean(x, axis=(2, 3), keepdims=True)
    assert out.shape == (N, C, 1, 1), out.shape
    assert jnp.allclose(out, ref, atol=1e-5, rtol=1e-5)

    # Multi-block reduction + tail masking (H*W=2500 split into 1024-wide lane blocks).
    x2 = jax.random.normal(k2, (2, 4, 50, 50), dtype=jnp.float32)
    out2 = jax.block_until_ready(global_avg_pool2d(x2, hw_blk=1024))
    ref2 = jnp.mean(x2, axis=(2, 3), keepdims=True)
    assert out2.shape == (2, 4, 1, 1), out2.shape
    assert jnp.allclose(out2, ref2, atol=1e-5, rtol=1e-5)

    # Row tiling (N*C=512 > 256 rows per block).
    x3 = jax.random.normal(k3, (2, 256, 8, 8), dtype=jnp.float32)
    out3 = jax.block_until_ready(global_avg_pool2d(x3))
    ref3 = jnp.mean(x3, axis=(2, 3), keepdims=True)
    assert out3.shape == (2, 256, 1, 1), out3.shape
    assert jnp.allclose(out3, ref3, atol=1e-5, rtol=1e-5)

    # bf16 input: f32 accumulation, bf16 output.
    x4 = jax.random.normal(k4, (2, 4, 32, 32), dtype=jnp.bfloat16)
    out4 = jax.block_until_ready(global_avg_pool2d(x4))
    ref4 = jnp.mean(x4.astype(jnp.float32), axis=(2, 3), keepdims=True)
    assert out4.shape == (2, 4, 1, 1), out4.shape
    assert jnp.allclose(out4.astype(jnp.float32), ref4, atol=1e-2, rtol=1e-2)

    print("KERNEL_OK")
</pallas_src>

<mosaic_0001>
module attributes {stable_mosaic.version = 11 : i64} {
  func.func @kernel(%arg0: i32, %arg1: i32, %arg2: memref<8x256xf32, #tpu.memory_space<vmem>>, %arg3: memref<8x1xf32, #tpu.memory_space<vmem>>) attributes {dimension_semantics = [#tpu.dimension_semantics<parallel>, #tpu.dimension_semantics<arbitrary>], iteration_bounds = array<i64: 1, 1>, scalar_prefetch = 0 : i64, scratch_operands = 0 : i64, tpu.core_type = #tpu.core_type<tc>, window_params = [{transform_indices = @transform_0, window_bounds = array<i64: 8, 256>}, {transform_indices = @transform_1, window_bounds = array<i64: 8, 1>}]} {
    %c0 = arith.constant 0 : index
    %c0_0 = arith.constant 0 : index
    %0 = vector.load %arg2[%c0, %c0_0] : memref<8x256xf32, #tpu.memory_space<vmem>>, vector<8x256xf32>
    %cst = arith.constant dense<0.000000e+00> : vector<8xf32>
    %1 = vector.multi_reduction <add>, %0, %cst [1] : vector<8x256xf32> to vector<8xf32>
    %2 = vector.shape_cast %1 : vector<8xf32> to vector<8x1xf32>
    %cst_1 = arith.constant 3.906250e-03 : f32
    %3 = vector.broadcast %cst_1 : f32 to vector<8x1xf32>
    %4 = arith.mulf %2, %3 : vector<8x1xf32>
    %c0_2 = arith.constant 0 : index
    %c0_3 = arith.constant 0 : index
    %5 = vector.load %arg3[%c0_2, %c0_3] : memref<8x1xf32, #tpu.memory_space<vmem>>, vector<8x1xf32>
    tpu.vector_store %arg3[%c0_2, %c0_3], %4 {strides = array<i32>} : memref<8x1xf32, #tpu.memory_space<vmem>>, vector<8x1xf32>,
    return
  }
  func.func @transform_0(%arg0: i32, %arg1: i32) -> (i32, i32) {
    %c0_i32 = arith.constant 0 : i32
    return %arg0, %arg1 : i32, i32
  }
  func.func @transform_1(%arg0: i32, %arg1: i32) -> (i32, i32) {
    %c0_i32 = arith.constant 0 : i32
    %c0_i32_0 = arith.constant 0 : i32
    return %arg0, %c0_i32 : i32, i32
  }
}

</mosaic_0001>

<bundles_post_ra>
// kernel: tpu_custom_call.1
= control target key start
LH: loop header
LB: loop body
LE: loop exit
PB: predicated region body
PF: predicated region fallthrough
CT: control target
= control target key end

     0   :  { %6 = vsyncpa [#allocation3], 0  ;;  %s62_s9 = smov [#allocation2]   ;;  %s79_s0 = inlined_call_operand.hbm [shape: f32[8,256], index: 0, kind: input, shape index: {}]   ;;  %s80_s1 = inlined_call_operand.vmem [shape: f32[8,1], index: 1, kind: output, shape index: {}]  }
   0x1   :  { %s12_s8 = sshll.u32 %s79_s0, 4  ;;  %s14_s10 = sshll.u32 %s62_s9, 4  ;;  %s13_s8 = int_to_ptr.hbm [resolvable:$true] %s12_s8  ;;  %s15_s10 = int_to_ptr.vmem [resolvable:$true] %s14_s10 }
   0x2   :  { %17 = dma.hbm_to_vmem [thread:$0]  %s13_s8, 256, %s15_s10, [#allocation3]  }
   0x3   :  { %60 = dma.done.wait [#allocation3], 256  }
   0x4   :  { %61 = vsyncadd [#allocation3], 4294967040  ;;  %v22_v0 = vld [vmem:[#allocation2] sm:$0xff]  ;;  %v23_v1 = vld [vmem:[#allocation2 + $0x8] sm:$0xff]  ;;  %vm28_vm0 = vcmask 7168  }
   0x5   :  { %v24_v2 = vadd.f32 %v23_v1, %v22_v0 }
   0x7   :  { %25 = vadd.xlane.f32.xlu0 %v24_v2 }
  0x7a   :  { %v26_v3 = vpop.xlane.xlu0 %25 }
  0x7b   :  { %v27_v4 = vmul.f32 0.00390625, %v26_v3 }
  0x7d   :  { %29 = vst.msk [vmem:[%s80_s1] sm:$0xff] %vm28_vm0, %v27_v4 }
  0x7e   :  { %34 = vsyncpa [#allocation3], 1 }

</bundles_post_ra>
